<compile_context>
chip_gen: v5e
topology: v5e:2x2
jax: 0.10.0
libtpu: 0.0.40
codegen_flags: <defaults>
</compile_context>

<pallas_src>
import jax
import jax.numpy as jnp
from jax.experimental import pallas as pl
from jax.experimental.pallas import tpu as pltpu

_SUBLANE = 8
_LARGE_BATCH_TILE = 1024  # rows per grid step on the large-batch path


def _round_up(n, m):
    return ((n + m - 1) // m) * m


def mymodel_kernel(x_ref, w1_ref, w2_ref, o_ref):
    # (tm, 20) @ (20, 20) @ (20, 20) — two MXU passes, f32 accumulation.
    h = jnp.dot(x_ref[...], w1_ref[...], preferred_element_type=jnp.float32)
    o_ref[...] = jnp.dot(h, w2_ref[...],
                         preferred_element_type=jnp.float32).astype(o_ref.dtype)


@jax.jit
def mymodel_forward(x, weight1, weight2):
    """y = (x @ weight1) @ weight2 for the weights held by MyModel."""
    B, F = x.shape
    assert weight1.shape == (F, F) and weight2.shape == (F, F)

    x = x.astype(jnp.float32)
    weight1 = weight1.astype(jnp.float32)
    weight2 = weight2.astype(jnp.float32)

    if B <= _LARGE_BATCH_TILE:
        # Single grid step, natural shapes everywhere (a full-extent block is
        # legal even when B is not a multiple of 8). No padding, no slicing.
        tm, Bp = B, B
        x_in = x
        needs_slice = False
    else:
        # Large batch: big tiles for HBM-roofline efficiency; pad only the batch
        # axis (zeros, exact math) so the grid divides evenly. Bp // tm >= 2 is
        # automatic here, so v7x gets both TensorCores busy.
        tm = _LARGE_BATCH_TILE
        Bp = _round_up(B, tm)
        x_in = jnp.zeros((Bp, F), jnp.float32).at[:B, :].set(x)
        needs_slice = True

    out = pl.pallas_call(
        mymodel_kernel,
        out_shape=jax.ShapeDtypeStruct((Bp, F), jnp.float32),
        grid=(Bp // tm,),
        in_specs=[
            pl.BlockSpec((tm, F), lambda i: (i, 0)),  # batch tile of x
            pl.BlockSpec((F, F), lambda i: (0, 0)),   # weight1, resident across grid
            pl.BlockSpec((F, F), lambda i: (0, 0)),   # weight2, resident across grid
        ],
        out_specs=pl.BlockSpec((tm, F), lambda i: (i, 0)),
        compiler_params=pltpu.CompilerParams(
            # Only meaningful on v7x (2 TCs/chip); harmless elsewhere.
            dimension_semantics=("parallel",),
        ),
    )(x_in, weight1, weight2)

    if needs_slice:
        out = out[:B]
    return out


if __name__ == "__main__":
    key = jax.random.PRNGKey(0)
    k_x, k_w1, k_w2 = jax.random.split(key, 3)

    B, F = 8, 20  # feature dim fixed at 20 by the module's weights

    # Deterministic init mirroring torch.rand (uniform [0, 1)).
    x = jax.random.uniform(k_x, (B, F), dtype=jnp.float32)
    weight1 = jax.random.uniform(k_w1, (F, F), dtype=jnp.float32)  # nn.Parameter
    weight2 = jax.random.uniform(k_w2, (F, F), dtype=jnp.float32)  # plain tensor

    y = mymodel_forward(x, weight1, weight2)
    y = jax.block_until_ready(y)

    # Sanity check against pure-JAX reference (same association as the kernel).
    y_ref = (x @ weight1) @ weight2
    assert y.shape == (B, F)
    assert jnp.allclose(y, y_ref, atol=1e-4, rtol=1e-4)

    print("KERNEL_OK")
</pallas_src>

<mosaic_0001>
module attributes {stable_mosaic.version = 11 : i64} {
  func.func @mymodel_kernel(%arg0: i32, %arg1: memref<8x20xf32, #tpu.memory_space<vmem>>, %arg2: memref<20x20xf32, #tpu.memory_space<vmem>>, %arg3: memref<20x20xf32, #tpu.memory_space<vmem>>, %arg4: memref<8x20xf32, #tpu.memory_space<vmem>>) attributes {dimension_semantics = [#tpu.dimension_semantics<parallel>], iteration_bounds = array<i64: 1>, scalar_prefetch = 0 : i64, scratch_operands = 0 : i64, tpu.core_type = #tpu.core_type<tc>, window_params = [{transform_indices = @transform_0, window_bounds = array<i64: 8, 20>}, {pipeline_mode = #tpu.pipeline_mode<synchronous>, transform_indices = @transform_1, window_bounds = array<i64: 20, 20>}, {pipeline_mode = #tpu.pipeline_mode<synchronous>, transform_indices = @transform_2, window_bounds = array<i64: 20, 20>}, {transform_indices = @transform_3, window_bounds = array<i64: 8, 20>}]} {
    %c0 = arith.constant 0 : index
    %c0_0 = arith.constant 0 : index
    %0 = vector.load %arg1[%c0, %c0_0] : memref<8x20xf32, #tpu.memory_space<vmem>>, vector<8x20xf32>
    %c0_1 = arith.constant 0 : index
    %c0_2 = arith.constant 0 : index
    %1 = vector.load %arg2[%c0_1, %c0_2] : memref<20x20xf32, #tpu.memory_space<vmem>>, vector<20x20xf32>
    %cst = arith.constant dense<0.000000e+00> : vector<8x20xf32>
    %2 = tpu.matmul %0, %1, %cst {dimension_numbers = #tpu.dot_dimension_numbers<[1], [0], [0], [1], [0, 0, 1, 1], [], []>} : vector<8x20xf32>, vector<20x20xf32>, vector<8x20xf32> -> vector<8x20xf32>
    %c0_3 = arith.constant 0 : index
    %c0_4 = arith.constant 0 : index
    %3 = vector.load %arg3[%c0_3, %c0_4] : memref<20x20xf32, #tpu.memory_space<vmem>>, vector<20x20xf32>
    %cst_5 = arith.constant dense<0.000000e+00> : vector<8x20xf32>
    %4 = tpu.matmul %2, %3, %cst_5 {dimension_numbers = #tpu.dot_dimension_numbers<[1], [0], [0], [1], [0, 0, 1, 1], [], []>} : vector<8x20xf32>, vector<20x20xf32>, vector<8x20xf32> -> vector<8x20xf32>
    %c0_6 = arith.constant 0 : index
    %c0_7 = arith.constant 0 : index
    %5 = vector.load %arg4[%c0_6, %c0_7] : memref<8x20xf32, #tpu.memory_space<vmem>>, vector<8x20xf32>
    tpu.vector_store %arg4[%c0_6, %c0_7], %4 {strides = array<i32>} : memref<8x20xf32, #tpu.memory_space<vmem>>, vector<8x20xf32>,
    return
  }
  func.func @transform_0(%arg0: i32) -> (i32, i32) {
    %c0_i32 = arith.constant 0 : i32
    %c0_i32_0 = arith.constant 0 : i32
    return %arg0, %c0_i32 : i32, i32
  }
  func.func @transform_1(%arg0: i32) -> (i32, i32) {
    %c0_i32 = arith.constant 0 : i32
    %c0_i32_0 = arith.constant 0 : i32
    %c0_i32_1 = arith.constant 0 : i32
    return %c0_i32, %c0_i32_0 : i32, i32
  }
  func.func @transform_2(%arg0: i32) -> (i32, i32) {
    %c0_i32 = arith.constant 0 : i32
    %c0_i32_0 = arith.constant 0 : i32
    %c0_i32_1 = arith.constant 0 : i32
    return %c0_i32, %c0_i32_0 : i32, i32
  }
  func.func @transform_3(%arg0: i32) -> (i32, i32) {
    %c0_i32 = arith.constant 0 : i32
    %c0_i32_0 = arith.constant 0 : i32
    return %arg0, %c0_i32 : i32, i32
  }
}

</mosaic_0001>

<bundles_post_ra>
// kernel: mymodel_forward.1
= control target key start
LH: loop header
LB: loop body
LE: loop exit
PB: predicated region body
PF: predicated region fallthrough
CT: control target
= control target key end

     0   :  { %8 = vsyncpa [#allocation3], 0  ;;  %s290_s0 = inlined_call_operand.hbm [shape: f32[8,20], index: 0, kind: input, shape index: {}]   ;;  %s291_s1 = inlined_call_operand.hbm [shape: f32[20,20], index: 1, kind: input, shape index: {}]   ;;  %s292_s2 = inlined_call_operand.hbm [shape: f32[20,20], index: 2, kind: input, shape index: {}]   ;;  %s293_s3 = inlined_call_operand.hbm [shape: f32[8,20], index: 3, kind: output, shape index: {}]  }
   0x1   :  { %9 = vsyncpa [#allocation6], 0  ;;  %s26_s14 = sshll.u32 %s291_s1, 4  ;;  %s27_s14 = int_to_ptr.hbm [resolvable:$true] %s26_s14 }
   0x2   :  { %10 = vsyncpa [#allocation4], 0  ;;  %s252_s15 = smov [#allocation5]   ;;  %s16_s19 = sshll.u32 %s290_s0, 4  ;;  %s17_s19 = int_to_ptr.hbm [resolvable:$true] %s16_s19 }
   0x3   :  { %s28_s16 = sshll.u32 %s252_s15, 4  ;;  %s253_s20 = smov 128   ;;  %s29_s16 = int_to_ptr.vmem [resolvable:$true] %s28_s16 }
   0x4   :  { %s254_s21 = smov 8   ;;  %s255_s22 = smov [#allocation2]  }
   0x5   :  { %34 = dma.hbm_to_vmem [thread:$0]  %s27_s14, 384, %s29_s16, [#allocation6], %s253_s20, %s253_s20, %s254_s21  }
   0x6   :  { %s18_s23 = sshll.u32 %s255_s22, 4  ;;  %s39_s26 = sshll.u32 %s292_s2, 4  ;;  %s19_s23 = int_to_ptr.vmem [resolvable:$true] %s18_s23  ;;  %s40_s26 = int_to_ptr.hbm [resolvable:$true] %s39_s26 }
   0x7   :  { %21 = dma.hbm_to_vmem [thread:$0]  %s17_s19, 128, %s19_s23, [#allocation3]  }
   0x8   :  { %s256_s1 = smov [#allocation7]  }
   0x9   :  { %s41_s27 = sshll.u32 %s256_s1, 4  ;;  %s42_s27 = int_to_ptr.vmem [resolvable:$true] %s41_s27 }
   0xa   :  { %47 = dma.hbm_to_vmem [thread:$0]  %s40_s26, 384, %s42_s27, [#allocation6], %s253_s20, %s253_s20, %s254_s21  }
   0xb   :  { %246 = dma.done.wait [#allocation3], 128  }
   0xc   :  { %247 = vsyncadd [#allocation3], 4294967168 }
   0xd   :  { %248 = dma.done.wait [#allocation6], 768  }
   0xe   :  { %249 = vsyncadd [#allocation6], 4294966528  ;;  %vm68_vm0 = vcmask 1043456   ;;  %v63_v0 = vld [vmem:[#allocation5 + $0x10] sm:$0xf]  ;;  %v62_v1 = vld [vmem:[#allocation5 + $0x8] sm:$0xff] }
   0xf   :  { %140 = vmatpush.msk.msra.mxu0 %vm68_vm0, %v63_v0  ;;  %v94_v2 = vld [vmem:[#allocation7 + $0x10] sm:$0xf]  ;;  %v93_v3 = vld [vmem:[#allocation7 + $0x8] sm:$0xff]  ;;  %v60_v5 = vld [vmem:[#allocation2] sm:$0xff]  ;;  %vm64_vm1 = vcmask 162816   ;;  %s257_s0 = smov [#allocation8]  }
  0x10   :  { %v61_v4 = vld [vmem:[#allocation5] sm:$0xff]  ;;  %142 = vmatpush.msk.msra.mxu1 %vm68_vm0, %v94_v2  ;;  %v92_v6 = vld [vmem:[#allocation7] sm:$0xff]  ;;  %s127_s2 = sshll.u32 %s257_s0, 4  ;;  %s129_s30 = sshll.u32 %s293_s3, 4  ;;  %s128_s2 = int_to_ptr.vmem [resolvable:$true] %s127_s2  ;;  %s130_s30 = int_to_ptr.hbm [resolvable:$true] %s129_s30 }
  0x11   :  { %86 = vmatpush.msra.mxu0 %v62_v1 }
  0x12   :  { %115 = vmatpush.msra.mxu1 %v93_v3 }
  0x13   :  { %87 = vmatpush.msra.mxu0 %v61_v4 }
  0x14   :  { %141 = vmatmul.msk.f32.vlgmr.msra.gmra.mxu0 %vm64_vm1, %v60_v5  ;;  %116 = vmatpush.msra.mxu1 %v92_v6 }
  0x91   :  { %v89_v7 = vpop.f32.mrf.mxu0 }
  0x92   :  { %143 = vmatmul.msk.f32.vlgmr.msra.gmra.mxu1 %vm64_vm1, %v89_v7 }
 0x10f   :  { %v118_v8 = vpop.f32.mrf.mxu1 }
 0x110   :  { %121 = vst.msk [vmem:[#allocation8] sm:$0xff] %vm64_vm1, %v118_v8 }
 0x111   :  { %132 = dma.vmem_to_hbm [thread:$0]  %s128_s2, 128, %s130_s30, [#allocation4]  }
 0x112   :  { %250 = dma.done.wait [#allocation4], 128  }
 0x113   :  { %251 = vsyncadd [#allocation4], 4294967168 }
 0x114   :  { %137 = vsyncpa [#allocation3], 1 }
 0x115   :  { %138 = vsyncpa [#allocation6], 1 }
 0x116   :  { %139 = vsyncpa [#allocation4], 1 }

</bundles_post_ra>
